<compile_context>
chip_gen: v7x
topology: tpu7x:2x2x1
jax: 0.10.0
libtpu: 0.0.40
codegen_flags: <defaults>
</compile_context>

<pallas_src>
import jax
import jax.numpy as jnp
from jax.experimental import pallas as pl
from jax.experimental.pallas import tpu as pltpu

EMBED_DIMS = [("driverID", 24000, 17), ("weekID", 7, 4), ("timeID", 1440, 9)]
OUT_COLS = sum(d for _, _, d in EMBED_DIMS) + 1  # 17 + 4 + 9 + 1 = 31

# TODO(synk): utils.normalize(dist, 'dist') uses dataset-config mean/std; replace
# these placeholder constants with the real stats for numerical parity.
DIST_MEAN = 10.0
DIST_STD = 5.0


def attr_net_kernel(d_idx_ref, w_idx_ref, t_idx_ref,      # scalar-prefetch ids (SMEM)
                    dist_ref,                              # (TB, 1) VMEM block
                    d_tab_hbm, w_tab_hbm, t_tab_hbm,       # embedding tables, left in HBM
                    out_ref,                               # (TB, 31) VMEM block
                    d_rows, w_rows, t_rows,                # VMEM gather buffers
                    sems):                                 # DMA semaphores, shape (3,)
    tb = out_ref.shape[0]
    base = pl.program_id(0) * tb

    def row_copy(tab_ref, rows_ref, r, idx, q):
        # One embedding row: HBM[idx, :] -> gather buffer row r, signaling sems[q].
        return pltpu.make_async_copy(tab_ref.at[idx], rows_ref.at[r], sems.at[q])

    # Issue all 3*TB row gathers before waiting on any of them (keep DMAs in flight).
    @pl.loop(0, tb)
    def _start(r):
        row_copy(d_tab_hbm, d_rows, r, d_idx_ref[base + r], 0).start()
        row_copy(w_tab_hbm, w_rows, r, w_idx_ref[base + r], 1).start()
        row_copy(t_tab_hbm, t_rows, r, t_idx_ref[base + r], 2).start()

    # Drain: every row copy of a given table has the same size, so TB waits on the
    # shared per-table semaphore consume exactly the TB completion signals.
    @pl.loop(0, tb)
    def _wait(r):
        row_copy(d_tab_hbm, d_rows, r, 0, 0).wait()
        row_copy(w_tab_hbm, w_rows, r, 0, 1).wait()
        row_copy(t_tab_hbm, t_rows, r, 0, 2).wait()

    # Write each output segment with a static sliced store (no lane concat, no
    # extra (TB, 31) intermediate).
    out_ref[:, pl.ds(0, 17)] = d_rows[...]
    out_ref[:, pl.ds(17, 4)] = w_rows[...]
    out_ref[:, pl.ds(21, 9)] = t_rows[...]
    out_ref[:, pl.ds(30, 1)] = (dist_ref[...] - DIST_MEAN) * (1.0 / DIST_STD)


def _round_up(x, m):
    return ((x + m - 1) // m) * m


def attr_net_forward(driver_id, week_id, time_id, dist, params, *, block_b=128):
    """driver_id/week_id/time_id: int (B,); dist: float (B,). Returns (B, 31) f32."""
    b = driver_id.shape[0]
    tb = min(block_b, _round_up(b, 8))      # batch tile (multiple of 8 sublanes)
    bp = _round_up(b, tb)                   # padded batch so the grid divides evenly
    pad = bp - b

    def prep_idx(x, vocab):
        x = jnp.asarray(x, jnp.int32).reshape(-1)
        x = jnp.clip(x, 0, vocab - 1)       # guard the DMA gather against OOB ids
        return jnp.pad(x, (0, pad))

    d_idx = prep_idx(driver_id, EMBED_DIMS[0][1])
    w_idx = prep_idx(week_id, EMBED_DIMS[1][1])
    t_idx = prep_idx(time_id, EMBED_DIMS[2][1])
    dist_p = jnp.pad(jnp.asarray(dist, jnp.float32).reshape(-1), (0, pad)).reshape(bp, 1)

    grid_spec = pltpu.PrefetchScalarGridSpec(
        num_scalar_prefetch=3,
        grid=(bp // tb,),
        in_specs=[
            pl.BlockSpec((tb, 1), lambda i, d, w, t: (i, 0)),   # dist block (pipelined)
            pl.BlockSpec(memory_space=pl.ANY),                  # driver table stays in HBM
            pl.BlockSpec(memory_space=pl.ANY),                  # week table stays in HBM
            pl.BlockSpec(memory_space=pl.ANY),                  # time table stays in HBM
        ],
        out_specs=pl.BlockSpec((tb, OUT_COLS), lambda i, d, w, t: (i, 0)),
        scratch_shapes=[
            pltpu.VMEM((tb, 17), jnp.float32),
            pltpu.VMEM((tb, 4), jnp.float32),
            pltpu.VMEM((tb, 9), jnp.float32),
            pltpu.SemaphoreType.DMA((3,)),
        ],
    )

    out = pl.pallas_call(
        attr_net_kernel,
        out_shape=jax.ShapeDtypeStruct((bp, OUT_COLS), jnp.float32),
        grid_spec=grid_spec,
        compiler_params=pltpu.CompilerParams(
            dimension_semantics=("parallel",),
            vmem_limit_bytes=16 * 1024 * 1024,
        ),
    )(
        d_idx, w_idx, t_idx,                 # scalar-prefetch operands (SMEM)
        dist_p,
        params["driverID"], params["weekID"], params["timeID"],
    )
    return out[:b]


def init_params(key):
    """nn.Embedding default init ~ N(0, 1), deterministic via PRNGKey."""
    params = {}
    for name, v, d in EMBED_DIMS:
        key, sub = jax.random.split(key)
        params[name] = jax.random.normal(sub, (v, d), dtype=jnp.float32)
    return params


def reference_forward(driver_id, week_id, time_id, dist, params):
    """Pure-JAX reference matching the PyTorch forward."""
    ems = [
        jnp.take(params["driverID"], driver_id, axis=0),
        jnp.take(params["weekID"], week_id, axis=0),
        jnp.take(params["timeID"], time_id, axis=0),
        ((dist - DIST_MEAN) / DIST_STD).reshape(-1, 1),
    ]
    return jnp.concatenate(ems, axis=1)


if __name__ == "__main__":
    B = 8
    key = jax.random.PRNGKey(0)
    params = init_params(key)

    k1, k2, k3, k4 = jax.random.split(jax.random.PRNGKey(0), 4)
    driver_id = jax.random.randint(k1, (B,), 0, 24000, dtype=jnp.int32)
    week_id = jax.random.randint(k2, (B,), 0, 7, dtype=jnp.int32)
    time_id = jax.random.randint(k3, (B,), 0, 1440, dtype=jnp.int32)
    dist = jax.random.uniform(k4, (B,), dtype=jnp.float32, minval=0.0, maxval=50.0)

    out = attr_net_forward(driver_id, week_id, time_id, dist, params)
    out = jax.block_until_ready(out)

    ref = reference_forward(driver_id, week_id, time_id, dist, params)
    assert out.shape == (B, OUT_COLS), out.shape
    assert jnp.allclose(out, ref, atol=1e-6, rtol=1e-6), "mismatch vs reference"

    print("KERNEL_OK")
</pallas_src>

<mosaic_0001>
module attributes {stable_mosaic.version = 11 : i64} {
  func.func @attr_net_kernel(%arg0: i32, %arg1: memref<8xi32, #tpu.memory_space<smem>>, %arg2: memref<8xi32, #tpu.memory_space<smem>>, %arg3: memref<8xi32, #tpu.memory_space<smem>>, %arg4: memref<8x1xf32, #tpu.memory_space<vmem>>, %arg5: memref<24000x17xf32, #tpu.memory_space<any>>, %arg6: memref<7x4xf32, #tpu.memory_space<any>>, %arg7: memref<1440x9xf32, #tpu.memory_space<any>>, %arg8: memref<8x31xf32, #tpu.memory_space<vmem>>, %arg9: memref<8x17xf32, #tpu.memory_space<vmem>>, %arg10: memref<8x4xf32, #tpu.memory_space<vmem>>, %arg11: memref<8x9xf32, #tpu.memory_space<vmem>>, %arg12: memref<3x!tpu.dma_semaphore, #tpu.memory_space<semaphore_mem>>) attributes {dimension_semantics = [#tpu.dimension_semantics<parallel>], iteration_bounds = array<i64: 1>, scalar_prefetch = 3 : i64, scratch_operands = 4 : i64, tpu.core_type = #tpu.core_type<tc>, window_params = [{transform_indices = @transform_0, window_bounds = array<i64: 8, 1>}, {}, {}, {}, {transform_indices = @transform_4, window_bounds = array<i64: 8, 31>}]} {
    %c8_i32 = arith.constant 8 : i32
    %0 = arith.muli %arg0, %c8_i32 : i32
    %c0_i32 = arith.constant 0 : i32
    %c8_i32_0 = arith.constant 8 : i32
    %1 = arith.addi %c0_i32, %c8_i32_0 : i32
    %c1_i32 = arith.constant 1 : i32
    scf.for %arg13 = %c0_i32 to %1 step %c1_i32  : i32 {
      %c1_i32_19 = arith.constant 1 : i32
      %15 = arith.muli %arg13, %c1_i32_19 : i32
      %c0_i32_20 = arith.constant 0 : i32
      %16 = arith.addi %c0_i32_20, %15 : i32
      %17 = arith.addi %0, %16 : i32
      %18 = arith.index_cast %17 : i32 to index
      %19 = memref.load %arg1[%18] : memref<8xi32, #tpu.memory_space<smem>>
      %c0_i32_21 = arith.constant 0 : i32
      %c0_i32_22 = arith.constant 0 : i32
      %20 = tpu.memref_slice %arg5[%19, %c0_i32_22] : memref<24000x17xf32, #tpu.memory_space<any>> -> memref<1x17xf32, #tpu.memory_space<any>>
      %21 = tpu.memref_squeeze %20 : memref<1x17xf32, #tpu.memory_space<any>> -> memref<17xf32, #tpu.memory_space<any>>
      %c0_i32_23 = arith.constant 0 : i32
      %22 = tpu.memref_slice %arg9[%16, %c0_i32_23] : memref<8x17xf32, #tpu.memory_space<vmem>> -> memref<1x17xf32, #tpu.memory_space<vmem>>
      %23 = tpu.memref_squeeze %22 : memref<1x17xf32, #tpu.memory_space<vmem>> -> memref<17xf32, #tpu.memory_space<vmem>>
      %24 = tpu.memref_slice %arg12[%c0_i32_21] : memref<3x!tpu.dma_semaphore, #tpu.memory_space<semaphore_mem>> -> memref<1x!tpu.dma_semaphore, #tpu.memory_space<semaphore_mem>>
      %25 = tpu.memref_squeeze %24 : memref<1x!tpu.dma_semaphore, #tpu.memory_space<semaphore_mem>> -> memref<!tpu.dma_semaphore, #tpu.memory_space<semaphore_mem>>
      tpu.enqueue_dma source(%21 : memref<17xf32, #tpu.memory_space<any>>) target(%23 : memref<17xf32, #tpu.memory_space<vmem>>) target_semaphore(%25 : memref<!tpu.dma_semaphore, #tpu.memory_space<semaphore_mem>>)
      %26 = arith.addi %0, %16 : i32
      %27 = arith.index_cast %26 : i32 to index
      %28 = memref.load %arg2[%27] : memref<8xi32, #tpu.memory_space<smem>>
      %c1_i32_24 = arith.constant 1 : i32
      %c0_i32_25 = arith.constant 0 : i32
      %29 = tpu.memref_slice %arg6[%28, %c0_i32_25] : memref<7x4xf32, #tpu.memory_space<any>> -> memref<1x4xf32, #tpu.memory_space<any>>
      %30 = tpu.memref_squeeze %29 : memref<1x4xf32, #tpu.memory_space<any>> -> memref<4xf32, #tpu.memory_space<any>>
      %c0_i32_26 = arith.constant 0 : i32
      %31 = tpu.memref_slice %arg10[%16, %c0_i32_26] : memref<8x4xf32, #tpu.memory_space<vmem>> -> memref<1x4xf32, #tpu.memory_space<vmem>>
      %32 = tpu.memref_squeeze %31 : memref<1x4xf32, #tpu.memory_space<vmem>> -> memref<4xf32, #tpu.memory_space<vmem>>
      %33 = tpu.memref_slice %arg12[%c1_i32_24] : memref<3x!tpu.dma_semaphore, #tpu.memory_space<semaphore_mem>> -> memref<1x!tpu.dma_semaphore, #tpu.memory_space<semaphore_mem>>
      %34 = tpu.memref_squeeze %33 : memref<1x!tpu.dma_semaphore, #tpu.memory_space<semaphore_mem>> -> memref<!tpu.dma_semaphore, #tpu.memory_space<semaphore_mem>>
      tpu.enqueue_dma source(%30 : memref<4xf32, #tpu.memory_space<any>>) target(%32 : memref<4xf32, #tpu.memory_space<vmem>>) target_semaphore(%34 : memref<!tpu.dma_semaphore, #tpu.memory_space<semaphore_mem>>)
      %35 = arith.addi %0, %16 : i32
      %36 = arith.index_cast %35 : i32 to index
      %37 = memref.load %arg3[%36] : memref<8xi32, #tpu.memory_space<smem>>
      %c2_i32 = arith.constant 2 : i32
      %c0_i32_27 = arith.constant 0 : i32
      %38 = tpu.memref_slice %arg7[%37, %c0_i32_27] : memref<1440x9xf32, #tpu.memory_space<any>> -> memref<1x9xf32, #tpu.memory_space<any>>
      %39 = tpu.memref_squeeze %38 : memref<1x9xf32, #tpu.memory_space<any>> -> memref<9xf32, #tpu.memory_space<any>>
      %c0_i32_28 = arith.constant 0 : i32
      %40 = tpu.memref_slice %arg11[%16, %c0_i32_28] : memref<8x9xf32, #tpu.memory_space<vmem>> -> memref<1x9xf32, #tpu.memory_space<vmem>>
      %41 = tpu.memref_squeeze %40 : memref<1x9xf32, #tpu.memory_space<vmem>> -> memref<9xf32, #tpu.memory_space<vmem>>
      %42 = tpu.memref_slice %arg12[%c2_i32] : memref<3x!tpu.dma_semaphore, #tpu.memory_space<semaphore_mem>> -> memref<1x!tpu.dma_semaphore, #tpu.memory_space<semaphore_mem>>
      %43 = tpu.memref_squeeze %42 : memref<1x!tpu.dma_semaphore, #tpu.memory_space<semaphore_mem>> -> memref<!tpu.dma_semaphore, #tpu.memory_space<semaphore_mem>>
      tpu.enqueue_dma source(%39 : memref<9xf32, #tpu.memory_space<any>>) target(%41 : memref<9xf32, #tpu.memory_space<vmem>>) target_semaphore(%43 : memref<!tpu.dma_semaphore, #tpu.memory_space<semaphore_mem>>)
    }
    %c8_i32_1 = arith.constant 8 : i32
    %c0_i32_2 = arith.constant 0 : i32
    %c8_i32_3 = arith.constant 8 : i32
    %2 = arith.addi %c0_i32_2, %c8_i32_3 : i32
    %c1_i32_4 = arith.constant 1 : i32
    scf.for %arg13 = %c0_i32_2 to %2 step %c1_i32_4  : i32 {
      %c1_i32_19 = arith.constant 1 : i32
      %15 = arith.muli %arg13, %c1_i32_19 : i32
      %c0_i32_20 = arith.constant 0 : i32
      %16 = arith.addi %c0_i32_20, %15 : i32
      %c0_i32_21 = arith.constant 0 : i32
      %c0_i32_22 = arith.constant 0 : i32
      %c0_i32_23 = arith.constant 0 : i32
      %17 = tpu.memref_slice %arg5[%c0_i32_21, %c0_i32_23] : memref<24000x17xf32, #tpu.memory_space<any>> -> memref<1x17xf32, #tpu.memory_space<any>>
      %18 = tpu.memref_squeeze %17 : memref<1x17xf32, #tpu.memory_space<any>> -> memref<17xf32, #tpu.memory_space<any>>
      %c0_i32_24 = arith.constant 0 : i32
      %19 = tpu.memref_slice %arg9[%16, %c0_i32_24] : memref<8x17xf32, #tpu.memory_space<vmem>> -> memref<1x17xf32, #tpu.memory_space<vmem>>
      %20 = tpu.memref_squeeze %19 : memref<1x17xf32, #tpu.memory_space<vmem>> -> memref<17xf32, #tpu.memory_space<vmem>>
      %21 = tpu.memref_slice %arg12[%c0_i32_22] : memref<3x!tpu.dma_semaphore, #tpu.memory_space<semaphore_mem>> -> memref<1x!tpu.dma_semaphore, #tpu.memory_space<semaphore_mem>>
      %22 = tpu.memref_squeeze %21 : memref<1x!tpu.dma_semaphore, #tpu.memory_space<semaphore_mem>> -> memref<!tpu.dma_semaphore, #tpu.memory_space<semaphore_mem>>
      tpu.wait_dma2 semaphore(%22 : memref<!tpu.dma_semaphore, #tpu.memory_space<semaphore_mem>>) src(%18 : memref<17xf32, #tpu.memory_space<any>>) dst(%20 : memref<17xf32, #tpu.memory_space<vmem>>)
      %c0_i32_25 = arith.constant 0 : i32
      %c1_i32_26 = arith.constant 1 : i32
      %c0_i32_27 = arith.constant 0 : i32
      %23 = tpu.memref_slice %arg6[%c0_i32_25, %c0_i32_27] : memref<7x4xf32, #tpu.memory_space<any>> -> memref<1x4xf32, #tpu.memory_space<any>>
      %24 = tpu.memref_squeeze %23 : memref<1x4xf32, #tpu.memory_space<any>> -> memref<4xf32, #tpu.memory_space<any>>
      %c0_i32_28 = arith.constant 0 : i32
      %25 = tpu.memref_slice %arg10[%16, %c0_i32_28] : memref<8x4xf32, #tpu.memory_space<vmem>> -> memref<1x4xf32, #tpu.memory_space<vmem>>
      %26 = tpu.memref_squeeze %25 : memref<1x4xf32, #tpu.memory_space<vmem>> -> memref<4xf32, #tpu.memory_space<vmem>>
      %27 = tpu.memref_slice %arg12[%c1_i32_26] : memref<3x!tpu.dma_semaphore, #tpu.memory_space<semaphore_mem>> -> memref<1x!tpu.dma_semaphore, #tpu.memory_space<semaphore_mem>>
      %28 = tpu.memref_squeeze %27 : memref<1x!tpu.dma_semaphore, #tpu.memory_space<semaphore_mem>> -> memref<!tpu.dma_semaphore, #tpu.memory_space<semaphore_mem>>
      tpu.wait_dma2 semaphore(%28 : memref<!tpu.dma_semaphore, #tpu.memory_space<semaphore_mem>>) src(%24 : memref<4xf32, #tpu.memory_space<any>>) dst(%26 : memref<4xf32, #tpu.memory_space<vmem>>)
      %c0_i32_29 = arith.constant 0 : i32
      %c2_i32 = arith.constant 2 : i32
      %c0_i32_30 = arith.constant 0 : i32
      %29 = tpu.memref_slice %arg7[%c0_i32_29, %c0_i32_30] : memref<1440x9xf32, #tpu.memory_space<any>> -> memref<1x9xf32, #tpu.memory_space<any>>
      %30 = tpu.memref_squeeze %29 : memref<1x9xf32, #tpu.memory_space<any>> -> memref<9xf32, #tpu.memory_space<any>>
      %c0_i32_31 = arith.constant 0 : i32
      %31 = tpu.memref_slice %arg11[%16, %c0_i32_31] : memref<8x9xf32, #tpu.memory_space<vmem>> -> memref<1x9xf32, #tpu.memory_space<vmem>>
      %32 = tpu.memref_squeeze %31 : memref<1x9xf32, #tpu.memory_space<vmem>> -> memref<9xf32, #tpu.memory_space<vmem>>
      %33 = tpu.memref_slice %arg12[%c2_i32] : memref<3x!tpu.dma_semaphore, #tpu.memory_space<semaphore_mem>> -> memref<1x!tpu.dma_semaphore, #tpu.memory_space<semaphore_mem>>
      %34 = tpu.memref_squeeze %33 : memref<1x!tpu.dma_semaphore, #tpu.memory_space<semaphore_mem>> -> memref<!tpu.dma_semaphore, #tpu.memory_space<semaphore_mem>>
      tpu.wait_dma2 semaphore(%34 : memref<!tpu.dma_semaphore, #tpu.memory_space<semaphore_mem>>) src(%30 : memref<9xf32, #tpu.memory_space<any>>) dst(%32 : memref<9xf32, #tpu.memory_space<vmem>>)
    }
    %c8_i32_5 = arith.constant 8 : i32
    %c0 = arith.constant 0 : index
    %c0_6 = arith.constant 0 : index
    %3 = vector.load %arg9[%c0, %c0_6] : memref<8x17xf32, #tpu.memory_space<vmem>>, vector<8x17xf32>
    %c0_7 = arith.constant 0 : index
    %c0_8 = arith.constant 0 : index
    %4 = vector.load %arg8[%c0_7, %c0_8] : memref<8x31xf32, #tpu.memory_space<vmem>>, vector<8x17xf32>
    tpu.vector_store %arg8[%c0_7, %c0_8], %3 {strides = array<i32>} : memref<8x31xf32, #tpu.memory_space<vmem>>, vector<8x17xf32>,
    %c0_9 = arith.constant 0 : index
    %c0_10 = arith.constant 0 : index
    %5 = vector.load %arg10[%c0_9, %c0_10] : memref<8x4xf32, #tpu.memory_space<vmem>>, vector<8x4xf32>
    %c0_11 = arith.constant 0 : index
    %c17 = arith.constant 17 : index
    %6 = vector.load %arg8[%c0_11, %c17] : memref<8x31xf32, #tpu.memory_space<vmem>>, vector<8x4xf32>
    tpu.vector_store %arg8[%c0_11, %c17], %5 {strides = array<i32>} : memref<8x31xf32, #tpu.memory_space<vmem>>, vector<8x4xf32>,
    %c0_12 = arith.constant 0 : index
    %c0_13 = arith.constant 0 : index
    %7 = vector.load %arg11[%c0_12, %c0_13] : memref<8x9xf32, #tpu.memory_space<vmem>>, vector<8x9xf32>
    %c0_14 = arith.constant 0 : index
    %c21 = arith.constant 21 : index
    %8 = vector.load %arg8[%c0_14, %c21] : memref<8x31xf32, #tpu.memory_space<vmem>>, vector<8x9xf32>
    tpu.vector_store %arg8[%c0_14, %c21], %7 {strides = array<i32>} : memref<8x31xf32, #tpu.memory_space<vmem>>, vector<8x9xf32>,
    %c0_15 = arith.constant 0 : index
    %c0_16 = arith.constant 0 : index
    %9 = vector.load %arg4[%c0_15, %c0_16] : memref<8x1xf32, #tpu.memory_space<vmem>>, vector<8x1xf32>
    %cst = arith.constant 1.000000e+01 : f32
    %10 = vector.broadcast %cst : f32 to vector<8x1xf32>
    %11 = arith.subf %9, %10 : vector<8x1xf32>
    %cst_17 = arith.constant 2.000000e-01 : f32
    %12 = vector.broadcast %cst_17 : f32 to vector<8x1xf32>
    %13 = arith.mulf %11, %12 : vector<8x1xf32>
    %c0_18 = arith.constant 0 : index
    %c30 = arith.constant 30 : index
    %14 = vector.load %arg8[%c0_18, %c30] : memref<8x31xf32, #tpu.memory_space<vmem>>, vector<8x1xf32>
    tpu.vector_store %arg8[%c0_18, %c30], %13 {strides = array<i32>} : memref<8x31xf32, #tpu.memory_space<vmem>>, vector<8x1xf32>,
    return
  }
  func.func @transform_0(%arg0: i32, %arg1: memref<8xi32, #tpu.memory_space<smem>>, %arg2: memref<8xi32, #tpu.memory_space<smem>>, %arg3: memref<8xi32, #tpu.memory_space<smem>>) -> (i32, i32) {
    %c0_i32 = arith.constant 0 : i32
    %c0_i32_0 = arith.constant 0 : i32
    return %arg0, %c0_i32 : i32, i32
  }
  func.func @transform_4(%arg0: i32, %arg1: memref<8xi32, #tpu.memory_space<smem>>, %arg2: memref<8xi32, #tpu.memory_space<smem>>, %arg3: memref<8xi32, #tpu.memory_space<smem>>) -> (i32, i32) {
    %c0_i32 = arith.constant 0 : i32
    %c0_i32_0 = arith.constant 0 : i32
    return %arg0, %c0_i32 : i32, i32
  }
}

</mosaic_0001>

<bundles_post_ra>
// kernel: tpu_custom_call.1
= control target key start
LH: loop header
LB: loop body
LE: loop exit
PB: predicated region body
PF: predicated region fallthrough
CT: control target
= control target key end

     0   :  { %s491_s0 = inlined_call_operand.vmem [shape: s32[8], index: 0, kind: input, shape index: {}]   ;;  %s492_s3 = inlined_call_operand.vmem [shape: f32[8,1], index: 3, kind: input, shape index: {}]   ;;  %s493_s4 = inlined_call_operand.vmem [shape: f32[24000,17], index: 4, kind: input, shape index: {}]   ;;  %s494_s5 = inlined_call_operand.vmem [shape: f32[7,4], index: 5, kind: input, shape index: {}]   ;;  %s495_s6 = inlined_call_operand.vmem [shape: f32[1440,9], index: 6, kind: input, shape index: {}]   ;;  %s496_s7 = inlined_call_operand.hbm [shape: f32[8,31], index: 7, kind: output, shape index: {}]   ;;  %s497_s1 = inlined_call_operand.vmem [shape: s32[8], index: 1, kind: input, shape index: {}]   ;;  %s498_s2 = inlined_call_operand.vmem [shape: s32[8], index: 2, kind: input, shape index: {}]  }
   0x1   :  { %s12_s26 = sshll.u32 %s491_s0, 4  ;;  %s16_s29 = sshll.u32 %s497_s1, 4  ;;  %s13_s26 = int_to_ptr.vmem [resolvable:$true] %s12_s26  ;;  %s17_s29 = int_to_ptr.vmem [resolvable:$true] %s16_s29 }
   0x2   :  { %s327_s30 = scalar_lea.vmem %s13_s26, 16  ;;  %p332_p1 = scmp.lt.s32.totalorder %s13_s26, %s13_s26 }
   0x3   :  { %p328_p0 = scmp.ne.s32.totalorder %s13_s26, %s327_s30  ;;  %p333_p2 = scmp.lt.s32.totalorder %s327_s30, %s327_s30 }
   0x5   :  { %p334_p3 = por %p333_p2, %p332_p1 }
   0x7   :  { %p335_p4 = pnand %p334_p3, %p328_p0 }
   0x9   :  { %338 = shalt.err (!%p335_p4)  }
   0xa   :  { %s411_s8 = smov [#allocation7]   ;;  %s339_s9 = scalar_lea.vmem %s17_s29, 16 }
   0xb   :  { %15 = dma.vmem_to_smem %s13_s26, 16, %s411_s8, [#allocation6] }
   0xc   :  { %p340_p5 = scmp.ne.s32.totalorder %s17_s29, %s339_s9  ;;  %p344_p6 = scmp.lt.s32.totalorder %s17_s29, %s17_s29 }
   0xd   :  { %p345_p7 = scmp.lt.s32.totalorder %s339_s9, %s339_s9 }
   0xf   :  { %p346_p8 = por %p345_p7, %p344_p6 }
  0x11   :  { %p347_p9 = pnand %p346_p8, %p340_p5 }
  0x13   :  { %350 = shalt.err (!%p347_p9)  }
  0x14   :  { %s412_s0 = smov [#allocation8]   ;;  %s20_s11 = sshll.u32 %s498_s2, 4  ;;  %s21_s11 = int_to_ptr.vmem [resolvable:$true] %s20_s11 }
  0x15   :  { %19 = dma.vmem_to_smem %s17_s29, 16, %s412_s0, [#allocation6] }
  0x16   :  { %s351_s12 = scalar_lea.vmem %s21_s11, 16  ;;  %p356_p11 = scmp.lt.s32.totalorder %s21_s11, %s21_s11 }
  0x17   :  { %p352_p10 = scmp.ne.s32.totalorder %s21_s11, %s351_s12  ;;  %p357_p12 = scmp.lt.s32.totalorder %s351_s12, %s351_s12 }
  0x19   :  { %p358_p13 = por %p357_p12, %p356_p11 }
  0x1b   :  { %p359_p0 = pnand %p358_p13, %p352_p10 }
  0x1d   :  { %362 = shalt.err (!%p359_p0)  }
  0x1e   :  { %s413_s13 = smov [#allocation9]  }
  0x1f   :  { %23 = dma.vmem_to_smem %s21_s11, 16, %s413_s13, [#allocation6] }
  0x20   :  { %393 = dma.done.wait [#allocation6], 48 }
  0x21   :  { %394 = vsyncadd [#allocation6], 4294967248 }
  0x22   :  { %25 = sfence }
  0x23   :  { %26 = vsyncpa [#allocation11], 0  ;;  %s403_s14 = smov 0  }
  0x24 LB: > { %s37_s15 = sld [smem:[#allocation7 + %s405_s14]]  ;;  %s39_s18 = scalar_lea.vmem [#allocation2], %s405_s14  ;;  %s405_s14 = sphi %s403_s14, %s35_s14  }
  0x2a   : > { %s38_s17 = scalar_lea.vmem %s493_s4, %s37_s15 }
  0x2b   : > { %v57_v0 = vld [vmem:[%s38_s17] sm:$0x1] }
  0x2c   : > { %58 = vst [vmem:[%s39_s18] sm:$0x1] %v57_v0 }
  0x2d   : > { %83 = vsyncadd [#allocation5], 16  ;;  %s84_s19 = sld [smem:[#allocation8 + %s405_s14]]  ;;  %s86_s23 = scalar_lea.vmem [#allocation3], %s405_s14 }
  0x33   : > { %s85_s22 = scalar_lea.vmem %s494_s5, %s84_s19 }
  0x34   : > { %v105_v1 = vld [vmem:[%s85_s22] sm:$0x1] }
  0x35   : > { %106 = vst [vmem:[%s86_s23] sm:$0x1] %v105_v1 }
  0x36   : > { %131 = vsyncadd [#allocation5 + $0x1], 16  ;;  %s132_s24 = sld [smem:[#allocation9 + %s405_s14]]  ;;  %s134_s28 = scalar_lea.vmem [#allocation4], %s405_s14 }
  0x3c   : > { %s133_s27 = scalar_lea.vmem %s495_s6, %s132_s24 }
  0x3d   : > { %v153_v2 = vld [vmem:[%s133_s27] sm:$0x1] }
  0x3e   : > { %154 = vst [vmem:[%s134_s28] sm:$0x1] %v153_v2 }
  0x3f   : > { %179 = vsyncadd [#allocation5 + $0x2], 16  ;;  %s35_s14 = sadd.s32 1, %s405_s14  }
  0x40   : > { %p32_p1 = scmp.ge.s32.totalorder %s35_s14, 8  }
  0x41   :  { %s407_s29 = smov (%p32_p1), 0  }
  0x42   :  { %34 = sbr.rel (!%p32_p1) target bundleno = 36 (0x24), region = 170 }
  0x49 LB: > { %395 = dma.done.wait [#allocation5], 16  ;;  %s409_s29 = sphi %s407_s29, %s185_s29  }
  0x4a   : > { %396 = vsyncadd [#allocation5], 4294967280 }
  0x4b   : > { %397 = dma.done.wait [#allocation5 + $0x1], 16 }
  0x4c   : > { %398 = vsyncadd [#allocation5 + $0x1], 4294967280 }
  0x4d   : > { %399 = dma.done.wait [#allocation5 + $0x2], 16 }
  0x4e   : > { %400 = vsyncadd [#allocation5 + $0x2], 4294967280  ;;  %s185_s29 = sadd.s32 1, %s409_s29  }
  0x4f   : > { %p182_p2 = scmp.ge.s32.totalorder %s185_s29, 8  }
  0x50   :  { %v197_v3 = vld [vmem:[#allocation3] sm:$0xff] (%p182_p2)  ;;  %v211_v4 = vld [vmem:[%s492_s3] sm:$0xff] (%p182_p2)  ;;  %s414_s9 = smov (%p182_p2), 17   ;;  %vm195_vm0 = vcmask (%p182_p2), 138240   ;;  %v204_v7 = vld [vmem:[#allocation4] sm:$0xff] (%p182_p2)  ;;  %s415_s4 = smov (%p182_p2), 21  }
  0x51   :  { %184 = sbr.rel (!%p182_p2) target bundleno = 73 (0x49), region = 181  ;;  %199 = vrot.lane.b32.xlu0 (%p182_p2), %v197_v3, %s414_s9  ;;  %v300_v5 = vadd.f32 (%p182_p2), -10.0, %v211_v4  ;;  %v194_v6 = vld [vmem:[#allocation2] sm:$0xff] (%p182_p2)  ;;  %s416_s5 = smov (%p182_p2), 30   ;;  %vm202_vm1 = vcmask (%p182_p2), 171144   ;;  %vm209_vm2 = vcmask (%p182_p2), 244904  }
  0x52   :  { %196 = vst.msk [vmem:[#allocation10] sm:$0xff] (%p182_p2), %vm195_vm0, %v194_v6  ;;  %s417_s6 = smov (%p182_p2), [#allocation10]   ;;  %vm218_vm3 = vcmask (%p182_p2), 253168  }
  0x53   :  { %v213_v8 = vmul.f32 (%p182_p2), 0.2, %v300_v5  ;;  %s226_s0 = sshll.u32 (%p182_p2), %s417_s6, 4  ;;  %s227_s0 = int_to_ptr.vmem [resolvable:$true] %s226_s0 }
  0x54   :  { %s363_s3 = scalar_lea.vmem (%p182_p2), %s227_s0, 128  ;;  %p368_p4 = scmp.lt.s32.totalorder (%p182_p2), %s227_s0, %s227_s0 }
  0x55   :  { %206 = vrot.lane.b32.xlu0 (%p182_p2), %v204_v7, %s415_s4  ;;  %215 = vrot.lane.b32.xlu1 (%p182_p2), %v213_v8, %s416_s5  ;;  %p364_p3 = scmp.ne.s32.totalorder (%p182_p2), %s227_s0, %s363_s3  ;;  %p369_p5 = scmp.lt.s32.totalorder (%p182_p2), %s363_s3, %s363_s3 }
  0x57   :  { %p370_p6 = por (%p182_p2), %p369_p5, %p368_p4 }
  0x59   :  { %p371_p7 = pnand %p370_p6, %p364_p3 }
  0xc3   :  { %v200_v9 = vpop.permute.xlu0 %199 }
  0xc4   :  { %203 = vst.msk [vmem:[#allocation10] sm:$0xff] %vm202_vm1, %v200_v9 }
  0xc7   :  { %v207_v10 = vpop.permute.xlu0 %206  ;;  %v216_v11 = vpop.permute.xlu1 %215 }
  0xc8   :  { %210 = vst.msk [vmem:[#allocation10] sm:$0xff] %vm209_vm2, %v207_v10 }
  0xc9   :  { %219 = vst.msk [vmem:[#allocation10] sm:$0xff] %vm218_vm3, %v216_v11 }
  0xca   :  { %374 = shalt.err (!%p371_p7)
}
  0xcb   :  { %s375_s11 = scalar_lea.hbm %s496_s7, 128 }
  0xcc   :  { %p376_p8 = scmp.ne.s32.totalorder %s496_s7, %s375_s11  ;;  %p379_p9 = scmp.lt.u32.totalorder %s375_s11, %s496_s7 }
  0xce   :  { %p381_p10 = pnand %p379_p9, %p376_p8 }
  0xd0   :  { %384 = shalt.err (!%p381_p10)
}
  0xd1   :  { %229 = dma.vmem_to_hbm [thread:$0]  %s227_s0, 128, %s496_s7, [#allocation11]  }
  0xd2   :  { %401 = dma.done.wait [#allocation11], 128  }
  0xd3   :  { %402 = vsyncadd [#allocation11], 4294967168 }
  0xd4   :  { %233 = vsyncpa [#allocation11], 1 }
  0xd5   :  { %234 = vsyncmov [#allocation5] }
  0xd8   :  { %s235_s17 = vpop.sfrf %234 }
  0xd9   :  { %p301_p11 = scmp.ne.s32.totalorder %s235_s17, 0 }
  0xdb   :  { %239 = shalt.err (%p301_p11)  }
  0xdc   :  { %241 = vsyncmov [#allocation5 + $0x1] }
  0xdf   :  { %s242_s18 = vpop.sfrf %241 }
  0xe0   :  { %p302_p12 = scmp.ne.s32.totalorder %s242_s18, 0 }
  0xe2   :  { %246 = shalt.err (%p302_p12)  }
  0xe3   :  { %248 = vsyncmov [#allocation5 + $0x2] }
  0xe6   :  { %s249_s19 = vpop.sfrf %248 }
  0xe7   :  { %p303_p13 = scmp.ne.s32.totalorder %s249_s19, 0 }
  0xe9   :  { %253 = shalt.err (%p303_p13)  }

</bundles_post_ra>
